<compile_context>
chip_gen: v7x
topology: tpu7x:2x2x1
jax: 0.10.0
libtpu: 0.0.40
codegen_flags: <defaults>
</compile_context>

<pallas_src>
import jax
import jax.numpy as jnp
from jax.experimental import pallas as pl
from jax.experimental.pallas import tpu as pltpu


def _prodeeploc_kernel(emb_ref, mask_ref, ln_w_ref, ln_b_ref,
                       attn_w_ref, attn_b_ref,
                       w1_ref, b1_ref, w2_ref, b2_ref,
                       logits_ref, attn_ref):
    # emb_ref: (TB, L, E)  native dtype;  mask_ref: (TB, L) f32
    x = emb_ref[...].astype(jnp.float32)                       # torch `.float()`

    # LayerNorm over the embedding dim (torch default eps=1e-5, affine).
    mean = jnp.mean(x, axis=-1, keepdims=True)
    centered = x - mean
    var = jnp.mean(centered * centered, axis=-1, keepdims=True)
    xn = centered * jax.lax.rsqrt(var + 1e-5)
    xn = xn * ln_w_ref[...] + ln_b_ref[...]                    # (TB, L, E)

    # Dropout(p=0.1) -> identity in eval mode (inference); omitted.

    # attention_net: Linear(E, 1) as a VPU broadcast-mul + lane reduce over E.
    scores = jnp.sum(xn * attn_w_ref[...], axis=-1) + attn_b_ref[...]   # (TB, L)

    # masked_fill(mask == 0, -1e9)
    scores = jnp.where(mask_ref[...] == 0.0, jnp.float32(-1e9), scores)

    # softmax over the sequence axis (lane axis here -> cheap lane reduce).
    m = jnp.max(scores, axis=-1, keepdims=True)
    e = jnp.exp(scores - m)
    attn = e / jnp.sum(e, axis=-1, keepdims=True)              # (TB, L)
    attn_ref[...] = attn                                       # lane-dense store

    # Attention pooling on the MXU: contract over L for each batch row.
    pooled = jnp.einsum('bql,ble->bqe', attn[:, None, :], xn,
                        preferred_element_type=jnp.float32)    # (TB, 1, E)
    pooled = pooled[:, 0, :]                                   # (TB, E)

    # MLP: Linear(E, M) -> ReLU -> Linear(M, C)
    h = jnp.dot(pooled, w1_ref[...],
                preferred_element_type=jnp.float32) + b1_ref[...]       # (TB, M)
    h = jnp.maximum(h, 0.0)
    logits_ref[...] = jnp.dot(h, w2_ref[...],
                              preferred_element_type=jnp.float32) + b2_ref[...]  # (TB, C)


def prodeeploc_forward(embeddings, mask, params, *, block_b=8):
    """embeddings: (B, L, E) (any float dtype); mask: (B, L), 0 where padded.

    Returns (logits (B, C) f32, attention_weights (B, L, 1) f32).
    """
    B, L, E = embeddings.shape
    M = params["w1"].shape[0]
    C = params["w2"].shape[0]

    # Batch-block size: block_b (default 8, sublane-aligned for f32) when we
    # have that many samples, otherwise the whole (padded==full) batch so the
    # output block's sublane dim equals the full array dim.
    TB = block_b if B >= block_b else B
    Bp = ((B + TB - 1) // TB) * TB
    grid = (Bp // TB,)

    emb = embeddings                                  # keep native dtype in HBM
    mask2 = mask.reshape(B, L).astype(jnp.float32)    # lane-dense (B, L)
    if Bp != B:
        pad = Bp - B
        emb = jnp.pad(emb, ((0, pad), (0, 0), (0, 0)))
        mask2 = jnp.pad(mask2, ((0, pad), (0, 0)), constant_values=1.0)

    ln_w2 = params["ln_w"].reshape(1, E).astype(jnp.float32)
    ln_b2 = params["ln_b"].reshape(1, E).astype(jnp.float32)
    attn_w2 = params["attn_w"].reshape(1, E).astype(jnp.float32)
    attn_b2 = params["attn_b"].reshape(1, 1).astype(jnp.float32)
    w1T = params["w1"].T.astype(jnp.float32)          # (E, M)
    b12 = params["b1"].reshape(1, M).astype(jnp.float32)
    w2T = params["w2"].T.astype(jnp.float32)          # (M, C)
    b22 = params["b2"].reshape(1, C).astype(jnp.float32)

    def shared_spec(shape):
        return pl.BlockSpec(shape, lambda b: (0, 0))

    itemsize = jnp.dtype(emb.dtype).itemsize
    weight_bytes = (2 * E + E + 1 + E * M + M + M * C + C) * 4
    cost = pl.CostEstimate(
        flops=int(Bp * L * E * 10                    # LayerNorm (VPU)
                  + 2 * Bp * L * E                   # attention scores
                  + 2 * Bp * L * E                   # attention pooling (MXU)
                  + 2 * Bp * (E * M + M * C)),       # MLP
        transcendentals=int(2 * Bp * L),             # exp + rsqrt per row
        bytes_accessed=int(Bp * L * E * itemsize + Bp * L * 4
                           + weight_bytes + Bp * (L + C) * 4),
    )

    # NOTE: for very large TB*L*E (e.g. L=1024, E=1280) the per-step block
    # dominates VMEM; on v7x (64 MiB VMEM) keep TB*L*E*itemsize*2 well under
    # the limit (prefer bf16 embeddings) or reduce block_b.
    logits, attn = pl.pallas_call(
        _prodeeploc_kernel,
        grid=grid,
        in_specs=[
            pl.BlockSpec((TB, L, E), lambda b: (b, 0, 0)),   # embeddings
            pl.BlockSpec((TB, L), lambda b: (b, 0)),         # mask (lane-dense)
            shared_spec((1, E)),                             # ln weight
            shared_spec((1, E)),                             # ln bias
            shared_spec((1, E)),                             # attention_net weight
            shared_spec((1, 1)),                             # attention_net bias
            shared_spec((E, M)),                             # mlp[0] weight^T
            shared_spec((1, M)),                             # mlp[0] bias
            shared_spec((M, C)),                             # mlp[2] weight^T
            shared_spec((1, C)),                             # mlp[2] bias
        ],
        out_specs=[
            pl.BlockSpec((TB, C), lambda b: (b, 0)),         # logits
            pl.BlockSpec((TB, L), lambda b: (b, 0)),         # attention weights
        ],
        out_shape=(
            jax.ShapeDtypeStruct((Bp, C), jnp.float32),
            jax.ShapeDtypeStruct((Bp, L), jnp.float32),
        ),
        compiler_params=pltpu.CompilerParams(
            dimension_semantics=("parallel",),
            vmem_limit_bytes=48 * 1024 * 1024,
        ),
        cost_estimate=cost,
    )(emb, mask2, ln_w2, ln_b2, attn_w2, attn_b2, w1T, b12, w2T, b22)

    return logits[:B], attn[:B].reshape(B, L, 1)


if __name__ == "__main__":
    import numpy as np

    # Small, TPU-friendly shapes consistent with the module's forward.
    B, L, E, M, C = 2, 8, 128, 32, 9

    key = jax.random.PRNGKey(0)
    ks = jax.random.split(key, 10)

    embeddings = jax.random.normal(ks[0], (B, L, E), dtype=jnp.float32)
    mask = jnp.ones((B, L), dtype=jnp.float32)
    mask = mask.at[1, 5:].set(0.0)  # pad the tail of batch element 1

    params = dict(
        ln_w=1.0 + 0.1 * jax.random.normal(ks[1], (E,), jnp.float32),
        ln_b=0.1 * jax.random.normal(ks[2], (E,), jnp.float32),
        attn_w=0.05 * jax.random.normal(ks[3], (1, E), jnp.float32),
        attn_b=0.05 * jax.random.normal(ks[4], (1,), jnp.float32),
        w1=0.05 * jax.random.normal(ks[5], (M, E), jnp.float32),
        b1=0.05 * jax.random.normal(ks[6], (M,), jnp.float32),
        w2=0.05 * jax.random.normal(ks[7], (C, M), jnp.float32),
        b2=0.05 * jax.random.normal(ks[8], (C,), jnp.float32),
    )

    logits, attn = jax.block_until_ready(prodeeploc_forward(embeddings, mask, params))

    # Pure-JAX reference (dropout is identity in eval mode).
    def reference(emb, msk, p):
        x = emb.astype(jnp.float32)
        mu = jnp.mean(x, -1, keepdims=True)
        var = jnp.mean((x - mu) ** 2, -1, keepdims=True)
        xn = (x - mu) / jnp.sqrt(var + 1e-5) * p["ln_w"] + p["ln_b"]
        s = xn @ p["attn_w"].T + p["attn_b"]               # (B, L, 1)
        s = jnp.where(msk[..., None] == 0, -1e9, s)
        a = jax.nn.softmax(s, axis=1)
        pooled = jnp.sum(xn * a, axis=1)                   # (B, E)
        h = jnp.maximum(pooled @ p["w1"].T + p["b1"], 0.0)
        return h @ p["w2"].T + p["b2"], a

    ref_logits, ref_attn = reference(embeddings, mask, params)
    np.testing.assert_allclose(np.asarray(logits), np.asarray(ref_logits),
                               rtol=1e-4, atol=1e-4)
    np.testing.assert_allclose(np.asarray(attn), np.asarray(ref_attn),
                               rtol=1e-4, atol=1e-5)
    print("KERNEL_OK")
</pallas_src>

<mosaic_0001>
module attributes {stable_mosaic.version = 11 : i64} {
  func.func @_prodeeploc_kernel(%arg0: i32, %arg1: memref<2x8x128xf32, #tpu.memory_space<vmem>>, %arg2: memref<2x8xf32, #tpu.memory_space<vmem>>, %arg3: memref<1x128xf32, #tpu.memory_space<vmem>>, %arg4: memref<1x128xf32, #tpu.memory_space<vmem>>, %arg5: memref<1x128xf32, #tpu.memory_space<vmem>>, %arg6: memref<1x1xf32, #tpu.memory_space<vmem>>, %arg7: memref<128x32xf32, #tpu.memory_space<vmem>>, %arg8: memref<1x32xf32, #tpu.memory_space<vmem>>, %arg9: memref<32x9xf32, #tpu.memory_space<vmem>>, %arg10: memref<1x9xf32, #tpu.memory_space<vmem>>, %arg11: memref<2x9xf32, #tpu.memory_space<vmem>>, %arg12: memref<2x8xf32, #tpu.memory_space<vmem>>) attributes {dimension_semantics = [#tpu.dimension_semantics<parallel>], iteration_bounds = array<i64: 1>, scalar_prefetch = 0 : i64, scratch_operands = 0 : i64, tpu.core_type = #tpu.core_type<tc>, window_params = [{transform_indices = @transform_0, window_bounds = array<i64: 2, 8, 128>}, {transform_indices = @transform_1, window_bounds = array<i64: 2, 8>}, {pipeline_mode = #tpu.pipeline_mode<synchronous>, transform_indices = @transform_2, window_bounds = array<i64: 1, 128>}, {pipeline_mode = #tpu.pipeline_mode<synchronous>, transform_indices = @transform_3, window_bounds = array<i64: 1, 128>}, {pipeline_mode = #tpu.pipeline_mode<synchronous>, transform_indices = @transform_4, window_bounds = array<i64: 1, 128>}, {pipeline_mode = #tpu.pipeline_mode<synchronous>, transform_indices = @transform_5, window_bounds = array<i64: 1, 1>}, {pipeline_mode = #tpu.pipeline_mode<synchronous>, transform_indices = @transform_6, window_bounds = array<i64: 128, 32>}, {pipeline_mode = #tpu.pipeline_mode<synchronous>, transform_indices = @transform_7, window_bounds = array<i64: 1, 32>}, {pipeline_mode = #tpu.pipeline_mode<synchronous>, transform_indices = @transform_8, window_bounds = array<i64: 32, 9>}, {pipeline_mode = #tpu.pipeline_mode<synchronous>, transform_indices = @transform_9, window_bounds = array<i64: 1, 9>}, {transform_indices = @transform_10, window_bounds = array<i64: 2, 9>}, {transform_indices = @transform_11, window_bounds = array<i64: 2, 8>}]} {
    %c0 = arith.constant 0 : index
    %c0_0 = arith.constant 0 : index
    %c0_1 = arith.constant 0 : index
    %0 = vector.load %arg1[%c0, %c0_0, %c0_1] : memref<2x8x128xf32, #tpu.memory_space<vmem>>, vector<2x8x128xf32>
    %cst = arith.constant dense<0.000000e+00> : vector<2x8xf32>
    %1 = vector.multi_reduction <add>, %0, %cst [2] : vector<2x8x128xf32> to vector<2x8xf32>
    %2 = vector.shape_cast %1 : vector<2x8xf32> to vector<2x8x1xf32>
    %cst_2 = arith.constant 1.280000e+02 : f32
    %3 = vector.broadcast %cst_2 : f32 to vector<2x8x1xf32>
    %4 = arith.divf %2, %3 : vector<2x8x1xf32>
    %5 = vector.broadcast %4 : vector<2x8x1xf32> to vector<2x8x128xf32>
    %6 = arith.subf %0, %5 : vector<2x8x128xf32>
    %7 = arith.mulf %6, %6 : vector<2x8x128xf32>
    %cst_3 = arith.constant dense<0.000000e+00> : vector<2x8xf32>
    %8 = vector.multi_reduction <add>, %7, %cst_3 [2] : vector<2x8x128xf32> to vector<2x8xf32>
    %9 = vector.shape_cast %8 : vector<2x8xf32> to vector<2x8x1xf32>
    %cst_4 = arith.constant 1.280000e+02 : f32
    %10 = vector.broadcast %cst_4 : f32 to vector<2x8x1xf32>
    %11 = arith.divf %9, %10 : vector<2x8x1xf32>
    %cst_5 = arith.constant 9.99999974E-6 : f32
    %12 = vector.broadcast %cst_5 : f32 to vector<2x8x1xf32>
    %13 = arith.addf %11, %12 : vector<2x8x1xf32>
    %14 = math.rsqrt %13 : vector<2x8x1xf32>
    %15 = vector.broadcast %14 : vector<2x8x1xf32> to vector<2x8x128xf32>
    %16 = arith.mulf %6, %15 : vector<2x8x128xf32>
    %c0_6 = arith.constant 0 : index
    %c0_7 = arith.constant 0 : index
    %17 = vector.load %arg3[%c0_6, %c0_7] : memref<1x128xf32, #tpu.memory_space<vmem>>, vector<1x128xf32>
    %18 = vector.shape_cast %17 : vector<1x128xf32> to vector<1x1x128xf32>
    %19 = vector.broadcast %18 : vector<1x1x128xf32> to vector<2x8x128xf32>
    %20 = arith.mulf %16, %19 : vector<2x8x128xf32>
    %c0_8 = arith.constant 0 : index
    %c0_9 = arith.constant 0 : index
    %21 = vector.load %arg4[%c0_8, %c0_9] : memref<1x128xf32, #tpu.memory_space<vmem>>, vector<1x128xf32>
    %22 = vector.shape_cast %21 : vector<1x128xf32> to vector<1x1x128xf32>
    %23 = vector.broadcast %22 : vector<1x1x128xf32> to vector<2x8x128xf32>
    %24 = arith.addf %20, %23 : vector<2x8x128xf32>
    %c0_10 = arith.constant 0 : index
    %c0_11 = arith.constant 0 : index
    %25 = vector.load %arg5[%c0_10, %c0_11] : memref<1x128xf32, #tpu.memory_space<vmem>>, vector<1x128xf32>
    %26 = vector.shape_cast %25 : vector<1x128xf32> to vector<1x1x128xf32>
    %27 = vector.broadcast %26 : vector<1x1x128xf32> to vector<2x8x128xf32>
    %28 = arith.mulf %24, %27 : vector<2x8x128xf32>
    %cst_12 = arith.constant dense<0.000000e+00> : vector<2x8xf32>
    %29 = vector.multi_reduction <add>, %28, %cst_12 [2] : vector<2x8x128xf32> to vector<2x8xf32>
    %c0_13 = arith.constant 0 : index
    %c0_14 = arith.constant 0 : index
    %30 = vector.load %arg6[%c0_13, %c0_14] : memref<1x1xf32, #tpu.memory_space<vmem>>, vector<1x1xf32>
    %31 = vector.broadcast %30 : vector<1x1xf32> to vector<2x8xf32>
    %32 = arith.addf %29, %31 : vector<2x8xf32>
    %c0_15 = arith.constant 0 : index
    %c0_16 = arith.constant 0 : index
    %33 = vector.load %arg2[%c0_15, %c0_16] : memref<2x8xf32, #tpu.memory_space<vmem>>, vector<2x8xf32>
    %cst_17 = arith.constant 0.000000e+00 : f32
    %34 = vector.broadcast %cst_17 : f32 to vector<2x8xf32>
    %35 = arith.cmpf oeq, %33, %34 : vector<2x8xf32>
    %cst_18 = arith.constant -1.000000e+09 : f32
    %36 = vector.broadcast %cst_18 : f32 to vector<2x8xf32>
    %37 = arith.select %35, %36, %32 : vector<2x8xi1>, vector<2x8xf32>
    %cst_19 = arith.constant dense<0xFF800000> : vector<2xf32>
    %38 = vector.multi_reduction <maximumf>, %37, %cst_19 [1] : vector<2x8xf32> to vector<2xf32>
    %39 = vector.shape_cast %38 : vector<2xf32> to vector<2x1xf32>
    %40 = vector.broadcast %39 : vector<2x1xf32> to vector<2x8xf32>
    %41 = arith.subf %37, %40 : vector<2x8xf32>
    %42 = math.exp %41 : vector<2x8xf32>
    %cst_20 = arith.constant dense<0.000000e+00> : vector<2xf32>
    %43 = vector.multi_reduction <add>, %42, %cst_20 [1] : vector<2x8xf32> to vector<2xf32>
    %44 = vector.shape_cast %43 : vector<2xf32> to vector<2x1xf32>
    %45 = vector.broadcast %44 : vector<2x1xf32> to vector<2x8xf32>
    %46 = arith.divf %42, %45 : vector<2x8xf32>
    %c0_21 = arith.constant 0 : index
    %c0_22 = arith.constant 0 : index
    %47 = vector.load %arg12[%c0_21, %c0_22] : memref<2x8xf32, #tpu.memory_space<vmem>>, vector<2x8xf32>
    tpu.vector_store %arg12[%c0_21, %c0_22], %46 {strides = array<i32>} : memref<2x8xf32, #tpu.memory_space<vmem>>, vector<2x8xf32>,
    %48 = vector.shape_cast %46 : vector<2x8xf32> to vector<2x1x8xf32>
    "tpu.trace_start"() <{level = 10 : i32, message = "bql,ble->bqe"}> : () -> ()
    %cst_23 = arith.constant dense<0.000000e+00> : vector<2x1x128xf32>
    %49 = tpu.matmul %48, %24, %cst_23 {dimension_numbers = #tpu.dot_dimension_numbers<[2], [1], [1], [2], [0, 0, 0, 1, 1, 2], [0], [0]>} : vector<2x1x8xf32>, vector<2x8x128xf32>, vector<2x1x128xf32> -> vector<2x1x128xf32>
    "tpu.trace_stop"() : () -> ()
    %50 = vector.shape_cast %49 : vector<2x1x128xf32> to vector<2x128xf32>
    %c0_24 = arith.constant 0 : index
    %c0_25 = arith.constant 0 : index
    %51 = vector.load %arg7[%c0_24, %c0_25] : memref<128x32xf32, #tpu.memory_space<vmem>>, vector<128x32xf32>
    %cst_26 = arith.constant dense<0.000000e+00> : vector<2x32xf32>
    %52 = tpu.matmul %50, %51, %cst_26 {dimension_numbers = #tpu.dot_dimension_numbers<[1], [0], [0], [1], [0, 0, 1, 1], [], []>} : vector<2x128xf32>, vector<128x32xf32>, vector<2x32xf32> -> vector<2x32xf32>
    %c0_27 = arith.constant 0 : index
    %c0_28 = arith.constant 0 : index
    %53 = vector.load %arg8[%c0_27, %c0_28] : memref<1x32xf32, #tpu.memory_space<vmem>>, vector<1x32xf32>
    %54 = vector.broadcast %53 : vector<1x32xf32> to vector<2x32xf32>
    %55 = arith.addf %52, %54 : vector<2x32xf32>
    %cst_29 = arith.constant 0.000000e+00 : f32
    %56 = vector.broadcast %cst_29 : f32 to vector<2x32xf32>
    %57 = arith.maximumf %55, %56 : vector<2x32xf32>
    %c0_30 = arith.constant 0 : index
    %c0_31 = arith.constant 0 : index
    %58 = vector.load %arg9[%c0_30, %c0_31] : memref<32x9xf32, #tpu.memory_space<vmem>>, vector<32x9xf32>
    %cst_32 = arith.constant dense<0.000000e+00> : vector<2x9xf32>
    %59 = tpu.matmul %57, %58, %cst_32 {dimension_numbers = #tpu.dot_dimension_numbers<[1], [0], [0], [1], [0, 0, 1, 1], [], []>} : vector<2x32xf32>, vector<32x9xf32>, vector<2x9xf32> -> vector<2x9xf32>
    %c0_33 = arith.constant 0 : index
    %c0_34 = arith.constant 0 : index
    %60 = vector.load %arg10[%c0_33, %c0_34] : memref<1x9xf32, #tpu.memory_space<vmem>>, vector<1x9xf32>
    %61 = vector.broadcast %60 : vector<1x9xf32> to vector<2x9xf32>
    %62 = arith.addf %59, %61 : vector<2x9xf32>
    %c0_35 = arith.constant 0 : index
    %c0_36 = arith.constant 0 : index
    %63 = vector.load %arg11[%c0_35, %c0_36] : memref<2x9xf32, #tpu.memory_space<vmem>>, vector<2x9xf32>
    tpu.vector_store %arg11[%c0_35, %c0_36], %62 {strides = array<i32>} : memref<2x9xf32, #tpu.memory_space<vmem>>, vector<2x9xf32>,
    return
  }
  func.func @transform_0(%arg0: i32) -> (i32, i32, i32) {
    %c0_i32 = arith.constant 0 : i32
    %c0_i32_0 = arith.constant 0 : i32
    %c0_i32_1 = arith.constant 0 : i32
    return %arg0, %c0_i32, %c0_i32_0 : i32, i32, i32
  }
  func.func @transform_1(%arg0: i32) -> (i32, i32) {
    %c0_i32 = arith.constant 0 : i32
    %c0_i32_0 = arith.constant 0 : i32
    return %arg0, %c0_i32 : i32, i32
  }
  func.func @transform_2(%arg0: i32) -> (i32, i32) {
    %c0_i32 = arith.constant 0 : i32
    %c0_i32_0 = arith.constant 0 : i32
    %c0_i32_1 = arith.constant 0 : i32
    return %c0_i32, %c0_i32_0 : i32, i32
  }
  func.func @transform_3(%arg0: i32) -> (i32, i32) {
    %c0_i32 = arith.constant 0 : i32
    %c0_i32_0 = arith.constant 0 : i32
    %c0_i32_1 = arith.constant 0 : i32
    return %c0_i32, %c0_i32_0 : i32, i32
  }
  func.func @transform_4(%arg0: i32) -> (i32, i32) {
    %c0_i32 = arith.constant 0 : i32
    %c0_i32_0 = arith.constant 0 : i32
    %c0_i32_1 = arith.constant 0 : i32
    return %c0_i32, %c0_i32_0 : i32, i32
  }
  func.func @transform_5(%arg0: i32) -> (i32, i32) {
    %c0_i32 = arith.constant 0 : i32
    %c0_i32_0 = arith.constant 0 : i32
    %c0_i32_1 = arith.constant 0 : i32
    return %c0_i32, %c0_i32_0 : i32, i32
  }
  func.func @transform_6(%arg0: i32) -> (i32, i32) {
    %c0_i32 = arith.constant 0 : i32
    %c0_i32_0 = arith.constant 0 : i32
    %c0_i32_1 = arith.constant 0 : i32
    return %c0_i32, %c0_i32_0 : i32, i32
  }
  func.func @transform_7(%arg0: i32) -> (i32, i32) {
    %c0_i32 = arith.constant 0 : i32
    %c0_i32_0 = arith.constant 0 : i32
    %c0_i32_1 = arith.constant 0 : i32
    return %c0_i32, %c0_i32_0 : i32, i32
  }
  func.func @transform_8(%arg0: i32) -> (i32, i32) {
    %c0_i32 = arith.constant 0 : i32
    %c0_i32_0 = arith.constant 0 : i32
    %c0_i32_1 = arith.constant 0 : i32
    return %c0_i32, %c0_i32_0 : i32, i32
  }
  func.func @transform_9(%arg0: i32) -> (i32, i32) {
    %c0_i32 = arith.constant 0 : i32
    %c0_i32_0 = arith.constant 0 : i32
    %c0_i32_1 = arith.constant 0 : i32
    return %c0_i32, %c0_i32_0 : i32, i32
  }
  func.func @transform_10(%arg0: i32) -> (i32, i32) {
    %c0_i32 = arith.constant 0 : i32
    %c0_i32_0 = arith.constant 0 : i32
    return %arg0, %c0_i32 : i32, i32
  }
  func.func @transform_11(%arg0: i32) -> (i32, i32) {
    %c0_i32 = arith.constant 0 : i32
    %c0_i32_0 = arith.constant 0 : i32
    return %arg0, %c0_i32 : i32, i32
  }
}

</mosaic_0001>

<bundles_post_ra>
// kernel: tpu_custom_call.1
= control target key start
LH: loop header
LB: loop body
LE: loop exit
PB: predicated region body
PF: predicated region fallthrough
CT: control target
= control target key end

     0   :  { %s908_s0 = inlined_call_operand.vmem [shape: f32[2,8,128], index: 0, kind: input, shape index: {}]   ;;  %s909_s1 = inlined_call_operand.vmem [shape: f32[2,8], index: 1, kind: input, shape index: {}]   ;;  %s910_s2 = inlined_call_operand.vmem [shape: f32[1,128], index: 2, kind: input, shape index: {}]   ;;  %s911_s3 = inlined_call_operand.vmem [shape: f32[1,128], index: 3, kind: input, shape index: {}]   ;;  %s912_s4 = inlined_call_operand.vmem [shape: f32[1,128], index: 4, kind: input, shape index: {}]   ;;  %s913_s5 = inlined_call_operand.<no memory space> [shape: f32[1,1], index: 5, kind: input, shape index: {}]   ;;  %s914_s6 = inlined_call_operand.vmem [shape: f32[128,32], index: 6, kind: input, shape index: {}]   ;;  %s915_s7 = inlined_call_operand.vmem [shape: f32[1,32], index: 7, kind: input, shape index: {}]   ;;  %s916_s8 = inlined_call_operand.vmem [shape: f32[32,9], index: 8, kind: input, shape index: {}]   ;;  %s917_s9 = inlined_call_operand.vmem [shape: f32[1,9], index: 9, kind: input, shape index: {}]   ;;  %s918_s10 = inlined_call_operand.hbm [shape: f32[2,9], index: 10, kind: output, shape index: {0}]   ;;  %s919_s11 = inlined_call_operand.hbm [shape: f32[2,8], index: 11, kind: output, shape index: {1}]  }
   0x1   :  { %v17_v0 = vstv %s913_s5 }
   0x2   :  { %18 = vst [vmem:[#allocation2] sm:$0x1] %v17_v0 }
   0x3   :  { %19 = vsyncpa [#allocation4], 0  ;;  %v41_v1 = vld [vmem:[%s908_s0] sm:$0xff] }
   0x4   :  { %20 = vsyncpa [#allocation6], 0  ;;  %43 = vadd.xlane.f32.xlu0 %v41_v1  ;;  %v42_v2 = vld [vmem:[%s908_s0 + $0x8] sm:$0xff]  ;;  %v707_v11 = vmov 0.0   ;;  %v708_v12 = vmov 0   ;;  %v113_v33 = vlaneseq  ;;  %vm123_vm0 = vcmask 1041409  }
   0x5   :  { %557 = vmatprep.subr.mxu1 %v707_v11  ;;  %650 = vset.pattern.permute.xlu0 %v708_v12  ;;  %v522_v20 = vld [vmem:[%s910_s2] ss:$0 sm:$0xff]  ;;  %vm127_vm2 = vcmask 58368   ;;  %vm709_vm3 = vmmov 0   ;;  %v309_v54 = vld [vmem:[%s914_s6 + $0x8] sm:$0xff]  ;;  %v310_v55 = vld [vmem:[%s914_s6 + $0x10] sm:$0xff] }
   0x6   :  { %v523_v22 = vld [vmem:[%s911_s3] ss:$0 sm:$0xff]  ;;  %v114_v34 = vand.u32 127, %v113_v33  ;;  %v797_v35 = vshrl.u32 %v113_v33, 7  ;;  %559 = vmatprep.mubr.msk.f32.mxu1 %vm709_vm3, %v707_v11  ;;  %599 = vmatprep.mubr.msk.f32.mxu0 %vm709_vm3, %v707_v11  ;;  %v710_v56 = vmov 0.0|0.0   ;;  %v311_v58 = vld [vmem:[%s914_s6 + $0x18] sm:$0xff] }
   0x7   :  { %v524_v25 = vld [vmem:[%s912_s4] ss:$0 sm:$0xff]  ;;  %613 = vmatprep.subr.bf16.mxu0 %v710_v56  ;;  %v617_v59 = vpack.c.bf16 %v311_v58, %v310_v55  ;;  %v313_v61 = vld [vmem:[%s914_s6 + $0x28] sm:$0xff]  ;;  %v314_v63 = vld [vmem:[%s914_s6 + $0x30] sm:$0xff]  ;;  %vm163_vm4 = vcmask 64512   ;;  %vm418_vm5 = vcmask 261120  }
   0x8   :  { %45 = vadd.xlane.f32.xlu0 %v42_v2  ;;  %v117_v37 = vsub.s32 %v114_v34, %v797_v35  ;;  %v109_v40 = vld [vmem:[%s909_s1] sm:$0x3]  ;;  %v315_v0 = vld [vmem:[%s914_s6 + $0x38] sm:$0xff]  ;;  %v409_v34 = vld [vmem:[%s916_s8 + $0x10] sm:$0xff]  ;;  %s712_s22 = smov [#allocation5]  }
   0x9   :  { %v525_v32 = vld [vmem:[#allocation2] ss:$0 sm:$0xff]  ;;  %vm110_vm1 = vcmp.eq.f32.partialorder %v109_v40, 0.0  ;;  %s510_s0 = sshll.u32 %s712_s22, 4  ;;  %s511_s0 = int_to_ptr.vmem [resolvable:$true] %s510_s0 }
   0xa   :  { %v308_v53 = vld [vmem:[%s914_s6] sm:$0xff]  ;;  %s659_s5 = scalar_lea.vmem %s511_s0, 32  ;;  %p664_p1 = scmp.lt.s32.totalorder %s511_s0, %s511_s0 }
   0xb   :  { %v614_v57 = vpack.c.bf16 %v309_v54, %v308_v53  ;;  %v312_v60 = vld [vmem:[%s914_s6 + $0x20] sm:$0xff]  ;;  %p660_p0 = scmp.ne.s32.totalorder %s511_s0, %s659_s5  ;;  %p665_p2 = scmp.lt.s32.totalorder %s659_s5, %s659_s5 }
   0xc   :  { %v620_v62 = vpack.c.bf16 %v313_v61, %v312_v60 }
   0xd   :  { %615 = vmatpush3.bf16.msra.mxu0 %v614_v57  ;;  %p666_p3 = por %p665_p2, %p664_p1 }
   0xe   :  { %616 = vmatprep.subr.bf16.mxu0 %v710_v56 }
   0xf   :  { %p667_p4 = pnand %p666_p3, %p660_p0 }
  0x11   :  { %618 = vmatpush3.bf16.msra.mxu0 %v617_v59 }
  0x12   :  { %619 = vmatprep.subr.bf16.mxu0 %v710_v56 }
  0x15   :  { %621 = vmatpush3.bf16.msra.mxu0 %v620_v62 }
  0x16   :  { %622 = vmatprep.subr.bf16.mxu0 %v710_v56 }
  0x91   :  { %v44_v3 = vpop.xlane.xlu0 %43 }
  0x92   :  { %v48_v4 = vmul.f32 0.0078125, %v44_v3  ;;  %v317_v3 = vld [vmem:[%s914_s6 + $0x48] sm:$0xff] }
  0x94   :  { %v50_v5 = vsub.f32 %v41_v1, %v48_v4  ;;  %v623_v1 = vpack.c.bf16 %v315_v0, %v314_v63 }
  0x95   :  { %v46_v6 = vpop.xlane.xlu0 %45 }
  0x96   :  { %v49_v7 = vmul.f32 0.0078125, %v46_v6  ;;  %v52_v8 = vmul.f32 %v50_v5, %v50_v5  ;;  %624 = vmatpush3.bf16.msra.mxu0 %v623_v1  ;;  %v319_v6 = vld [vmem:[%s914_s6 + $0x58] sm:$0xff] }
  0x97   :  { %625 = vmatprep.subr.bf16.mxu0 %v710_v56 }
  0x98   :  { %v51_v9 = vsub.f32 %v42_v2, %v49_v7  ;;  %54 = vadd.xlane.f32.xlu1 %v52_v8  ;;  %v316_v2 = vld [vmem:[%s914_s6 + $0x40] sm:$0xff] }
  0x99   :  { %v626_v4 = vpack.c.bf16 %v317_v3, %v316_v2 }
  0x9a   :  { %v53_v10 = vmul.f32 %v51_v9, %v51_v9 }
  0x9b   :  { %627 = vmatpush3.bf16.msra.mxu0 %v626_v4 }
  0x9c   :  { %56 = vadd.xlane.f32.xlu1 %v53_v10  ;;  %628 = vmatprep.subr.bf16.mxu0 %v710_v56 }
 0x125   :  { %v55_v13 = vpop.xlane.xlu1 %54 }
 0x126   :  { %v58_v14 = vmul.f32 0.0078125, %v55_v13 }
 0x128   :  { %v60_v15 = vadd.f32 1e-05, %v58_v14 }
 0x129   :  { %v57_v16 = vpop.xlane.xlu1 %56 }
 0x12a   :  { %651 = vrsqrt.f32 %v60_v15  ;;  %v59_v17 = vmul.f32 0.0078125, %v57_v16 }
 0x12c   :  { %v61_v18 = vadd.f32 1e-05, %v59_v17 }
 0x12e   :  { %653 = vrsqrt.f32 %v61_v18 }
 0x134   :  { %v652_v19 = vpop.eup %651 }
 0x135   :  { %v64_v21 = vmul.f32 %v652_v19, %v50_v5  ;;  %v318_v5 = vld [vmem:[%s914_s6 + $0x50] sm:$0xff] }
 0x136   :  { %v629_v7 = vpack.c.bf16 %v319_v6, %v318_v5 }
 0x137   :  { %v73_v23 = vmul.f32 %v522_v20, %v64_v21  ;;  %v321_v21 = vld [vmem:[%s914_s6 + $0x68] sm:$0xff] }
 0x138   :  { %v654_v24 = vpop.eup %653  ;;  %630 = vmatpush3.bf16.msra.mxu0 %v629_v7 }
 0x139   :  { %v82_v26 = vadd.f32 %v523_v22, %v73_v23  ;;  %v65_v27 = vmul.f32 %v654_v24, %v51_v9  ;;  %631 = vmatprep.subr.bf16.mxu0 %v710_v56  ;;  %v711_v9 = vmov 1966171168   ;;  %v322_v23 = vld [vmem:[%s914_s6 + $0x70] sm:$0xff]  ;;  %v323_v24 = vld [vmem:[%s914_s6 + $0x78] sm:$0xff] }
 0x13a   :  { %v142_v10 = vunpack.c.l.s4 %v711_v9 }
 0x13b   :  { %558 = vmatpush3.msra.mxu1 %v82_v26  ;;  %v91_v28 = vmul.f32 %v524_v25, %v82_v26  ;;  %v74_v29 = vmul.f32 %v522_v20, %v65_v27  ;;  %v320_v20 = vld [vmem:[%s914_s6 + $0x60] sm:$0xff]  ;;  %v408_v26 = vld [vmem:[%s916_s8 + $0x8] sm:$0xff] }
 0x13c   :  { %562 = vmatprep.subr.mxu1 %v707_v11  ;;  %v143_v12 = vunpack.c.0.s8 %v142_v10 }
 0x13d   :  { %93 = vadd.xlane.f32.xlu0 %v91_v28  ;;  %v794_v30 = vadd.f32 %v523_v22, %v74_v29  ;;  %v632_v22 = vpack.c.bf16 %v321_v21, %v320_v20 }
 0x13e   :  { %v146_v13 = vsub.s32 %v143_v12, %v797_v35  ;;  %v410_v35 = vld [vmem:[%s916_s8 + $0x18] sm:$0xff] }
 0x13f   :  { %v92_v31 = vmul.f32 %v524_v25, %v794_v30  ;;  %633 = vmatpush3.bf16.msra.mxu0 %v632_v22  ;;  %v407_v25 = vld [vmem:[%s916_s8] sm:$0xff] }
 0x140   :  { %634 = vmatprep.subr.bf16.mxu0 %v710_v56  ;;  %v638_v27 = vpack.c.bf16 %v408_v26, %v407_v25 }
 0x141   :  { %95 = vadd.xlane.f32.xlu1 %v92_v31 }
 0x153   :  { %104 = vperm.xlu0 %650, %v525_v32  }
 0x1ca   :  { %v94_v36 = vpop.xlane.xlu0 %93 }
 0x1ce   :  { %v96_v38 = vpop.xlane.xlu1 %95 }
 0x1d2   :  { %v105_v39 = vpop.permute.xlu0 %104 }
 0x1d3   :  { %v107_v41 = vadd.f32 %v105_v39, %v94_v36  ;;  %v108_v42 = vadd.f32 %v105_v39, %v96_v38  ;;  %v641_v36 = vpack.c.bf16 %v410_v35, %v409_v34 }
 0x1d5   :  { %v118_v43 = vrot.slane %v107_v41, %v117_v37  ;;  %v122_v44 = vrot.slane %v108_v42, %v117_v37  ;;  %v528_v37 = vld [vmem:[%s915_s7] ss:$0 sm:$0xff] }
 0x1d7   :  { %v124_v45 = vsel %vm123_vm0, %v122_v44, %v118_v43 }
 0x1d8   :  { %v126_v46 = vsel %vm110_vm1, -1e+09, %v124_v45 }
 0x1d9   :  { %v128_v47 = vsel %vm127_vm2, %v126_v46, -inf }
 0x1da   :  { %129 = vmax.xlane.f32.xlu1 %v128_v47 }
 0x267   :  { %v130_v48 = vpop.xlane.xlu1 %129 }
 0x268   :  { %v131_v49 = vsub.f32 %v126_v46, %v130_v48 }
 0x26a   :  { %v132_v50 = vmul.f32 1.442695, %v131_v49 }
 0x26c   :  { %655 = vpow2.f32 %v132_v50 }
 0x276   :  { %v656_v51 = vpop.eup %655 }
 0x277   :  { %v134_v52 = vsel %vm127_vm2, %v656_v51, 0.0 }
 0x278   :  { %135 = vadd.xlane.f32.xlu1 %v134_v52 }
 0x305   :  { %v136_v8 = vpop.xlane.xlu1 %135 }
 0x306   :  { %657 = vrcp.f32 %v136_v8 }
 0x310   :  { %v658_v14 = vpop.eup %657 }
 0x311   :  { %v138_v15 = vmul.f32 %v658_v14, %v656_v51 }
 0x313   :  { %139 = vst.msk [vmem:[#allocation5] sm:$0x3] %vm127_vm2, %v138_v15  ;;  %v147_v16 = vrot.slane %v138_v15, %v146_v13 }
 0x315   :  { %v148_v17 = vcombine.high %v147_v16, %v147_v16  ;;  %v155_v18 = vrot.slane %v147_v16, %v146_v13 }
 0x317   :  { %560 = vmatmul.mubr.msk.f32.vlgmr.msra.gmra.mrb[0].mxu1 %vm163_vm4, %v155_v18  ;;  %v162_v19 = vrot.slane %v148_v17, %v146_v13 }
 0x318   :  { %563 = vmatpush3.msra.mxu1 %v794_v30  ;;  %564 = vmatprep.mubr.msk.f32.mxu1 %vm709_vm3, %v707_v11 }
 0x319   :  { %637 = vmatprep.subr.bf16.mxu1 %v710_v56 }
 0x31b   :  { %565 = vmatmul.mubr.msk.f32.vlgmr.msra.gmra.mrb[2].mxu1 %vm163_vm4, %v162_v19 }
 0x31c   :  { %610 = vmatprep.mubr.msk.f32.mxu1 %vm709_vm3, %v707_v11  ;;  %v635_v11 = vpack.c.bf16 %v323_v24, %v322_v23  ;;  %639 = vmatpush3.bf16.msra.mxu1 %v638_v27 }
 0x31d   :  { %640 = vmatprep.subr.bf16.mxu1 %v710_v56 }
 0x31e   :  { %636 = vmatpush3.bf16.msra.mxu0 %v635_v11 }
 0x320   :  { %642 = vmatpush3.bf16.msra.mxu1 %v641_v36 }
 0x3ea   :  { %v232_v28 = vpop.f32.mrb[0].mxu1 }
 0x3eb   :  { %v561_v29 = vpop.f32.mrb[1].mxu1 }
 0x3ee   :  { %v304_v30 = vpop.f32.mrb[2].mxu1 }
 0x3ef   :  { %v333_v31 = vrot.slane %v304_v30, 7  ;;  %v566_v32 = vpop.f32.mrb[3].mxu1 }
 0x3f1   :  { %v334_v33 = vsel %vm123_vm0, %v333_v31, %v232_v28 }
 0x3f2   :  { %600 = vmatmul.mubr.f32.vlgmr.msra.gmra.mrb[0].mxu0 %v334_v33 }
 0x4c5   :  { %v402_v38 = vpop.f32.mrb[0].mxu0 }
 0x4c6   :  { %v403_v39 = vadd.f32 %v528_v37, %v402_v38  ;;  %v601_v40 = vpop.f32.mrb[1].mxu0 }
 0x4c8   :  { %v406_v41 = vmax.f32 %v403_v39, 0.0 }
 0x4ca   :  { %611 = vmatmul.mubr.msk.f32.vlgmr.msra.gmra.mrb[4].mxu1 %vm418_vm5, %v406_v41 }
 0x4cb   :  { %670 = shalt.err (!%p667_p4)
}
 0x4cc   :  { %s671_s7 = scalar_lea.hbm %s919_s11, 32 }
 0x4cd   :  { %p672_p5 = scmp.ne.s32.totalorder %s919_s11, %s671_s7  ;;  %p675_p6 = scmp.lt.u32.totalorder %s671_s7, %s919_s11 }
 0x4cf   :  { %p677_p7 = pnand %p675_p6, %p672_p5 }
 0x4d1   :  { %680 = shalt.err (!%p677_p7)
}
 0x4d2   :  { %513 = dma.vmem_to_hbm [thread:$0]  %s511_s0, 32, %s919_s11, [#allocation6]   ;;  %v529_v42 = vld [vmem:[%s917_s9] ss:$0 sm:$0xff]  ;;  %vm492_vm6 = vcmask 66560  }
 0x4d3   :  { %s713_s28 = smov [#allocation3]  }
 0x4d4   :  { %s500_s29 = sshll.u32 %s713_s28, 4  ;;  %s501_s29 = int_to_ptr.vmem [resolvable:$true] %s500_s29 }
 0x4d5   :  { %s681_s30 = scalar_lea.vmem %s501_s29, 32  ;;  %p686_p9 = scmp.lt.s32.totalorder %s501_s29, %s501_s29 }
 0x4d6   :  { %p682_p8 = scmp.ne.s32.totalorder %s501_s29, %s681_s30  ;;  %p687_p10 = scmp.lt.s32.totalorder %s681_s30, %s681_s30 }
 0x4d8   :  { %p688_p11 = por %p687_p10, %p686_p9 }
 0x4da   :  { %p689_p12 = pnand %p688_p11, %p682_p8 }
 0x59d   :  { %v488_v43 = vpop.f32.mrb[4].mxu1 }
 0x59e   :  { %v489_v44 = vadd.f32 %v529_v42, %v488_v43  ;;  %v612_v45 = vpop.f32.mrb[5].mxu1 }
 0x5a0   :  { %493 = vst.msk [vmem:[#allocation3] sm:$0x3] %vm492_vm6, %v489_v44 }
 0x5a1   :  { %692 = shalt.err (!%p689_p12)
}
 0x5a2   :  { %s693_s13 = scalar_lea.hbm %s918_s10, 32 }
 0x5a3   :  { %p694_p13 = scmp.ne.s32.totalorder %s918_s10, %s693_s13  ;;  %p697_p0 = scmp.lt.u32.totalorder %s693_s13, %s918_s10 }
 0x5a5   :  { %p699_p1 = pnand %p697_p0, %p694_p13 }
 0x5a7   :  { %702 = shalt.err (!%p699_p1)
}
 0x5a8   :  { %503 = dma.vmem_to_hbm [thread:$0]  %s501_s29, 32, %s918_s10, [#allocation4]  }
 0x5a9   :  { %703 = dma.done.wait [#allocation4], 32  }
 0x5aa   :  { %704 = vsyncadd [#allocation4], 4294967264 }
 0x5ab   :  { %705 = dma.done.wait [#allocation6], 32  }
 0x5ac   :  { %706 = vsyncadd [#allocation6], 4294967264 }
 0x5ad   :  { %520 = vsyncpa [#allocation4], 1 }
 0x5ae   :  { %521 = vsyncpa [#allocation6], 1 }

</bundles_post_ra>
